<compile_context>
chip_gen: v6e
topology: v6e:2x2x1
jax: 0.10.0
libtpu: 0.0.40
codegen_flags: <defaults>
</compile_context>

<pallas_src>
import jax
import jax.numpy as jnp
from jax.experimental import pallas as pl
from jax.experimental.pallas import tpu as pltpu


def mlp_h2_kernel(x_ref, w1_ref, b1_ref, w2_ref, b2_ref, w3_ref, b3_ref, out_ref):
    # Layer 1: (TB, D_in) @ (D_in, H1) + (1, H1), ReLU.  bf16 MXU, f32 accumulate.
    x_bf = x_ref[...].astype(jnp.bfloat16)
    w1_bf = w1_ref[...].astype(jnp.bfloat16)
    h1 = jnp.dot(x_bf, w1_bf, preferred_element_type=jnp.float32)
    h1 = jnp.maximum(h1 + b1_ref[...], 0.0)
    # (dropout1: identity in eval mode)

    # Layer 2: (TB, H1) @ (H1, H2) + (1, H2), ReLU.
    w2_bf = w2_ref[...].astype(jnp.bfloat16)
    h2 = jnp.dot(h1.astype(jnp.bfloat16), w2_bf, preferred_element_type=jnp.float32)
    h2 = jnp.maximum(h2 + b2_ref[...], 0.0)
    # (dropout2: identity in eval mode)

    # Output layer: width-1 matmul done as VPU multiply + lane reduction (frees the MXU,
    # avoids an N=1 MXU pass).  w3_ref is a (1, H2) row, b3 is a scalar in SMEM.
    y = jnp.sum(h2 * w3_ref[...], axis=-1, keepdims=True) + b3_ref[0, 0]
    out_ref[...] = y.astype(out_ref.dtype)


def mlp_h2_forward(x, w1, b1, w2, b2, w3, b3, *, tb=128):
    """Fused MLP forward.  All args float32.

    x : (B, D_in)
    w1: (D_in, H1), b1: (1, H1)
    w2: (H1, H2),  b2: (1, H2)
    w3: (H2, 1),   b3: (1, 1)
    returns (B, 1)
    """
    B, D_in = x.shape
    H1 = w1.shape[1]
    H2 = w2.shape[1]

    w3_row = w3.reshape(1, H2)       # lane-major row for the VPU reduction
    b3_s = b3.reshape(1, 1)          # scalar, lives in SMEM

    # Effective batch tile: multiple of 8 (sublane), capped by the (padded) batch.
    def round_up(a, m):
        return (a + m - 1) // m * m

    tb_eff = min(tb, round_up(B, 8))
    b_pad = round_up(B, tb_eff)
    if b_pad != B:
        x = jnp.pad(x, ((0, b_pad - B), (0, 0)))
    grid = (pl.cdiv(b_pad, tb_eff),)

    out = pl.pallas_call(
        mlp_h2_kernel,
        out_shape=jax.ShapeDtypeStruct((b_pad, 1), jnp.float32),
        grid_spec=pltpu.PrefetchScalarGridSpec(
            num_scalar_prefetch=0,
            grid=grid,
            in_specs=[
                # x streamed along the batch grid axis.
                pl.BlockSpec((tb_eff, D_in), lambda i: (i, 0)),
                # Weights / biases: constant index maps -> VMEM-resident, DMA'd once.
                pl.BlockSpec((D_in, H1), lambda i: (0, 0)),
                pl.BlockSpec((1, H1), lambda i: (0, 0)),
                pl.BlockSpec((H1, H2), lambda i: (0, 0)),
                pl.BlockSpec((1, H2), lambda i: (0, 0)),
                pl.BlockSpec((1, H2), lambda i: (0, 0)),
                # b3 is a single scalar -> SMEM (no vreg-padded VMEM tile).
                pl.BlockSpec(memory_space=pltpu.MemorySpace.SMEM),
            ],
            out_specs=pl.BlockSpec((tb_eff, 1), lambda i: (i, 0)),
        ),
        compiler_params=pltpu.CompilerParams(
            dimension_semantics=("parallel",),  # megacore batch split on v7x
        ),
    )(x, w1, b1, w2, b2, w3_row, b3_s)
    return out[:B]


def init_linear_params(key, in_features, out_features):
    """Deterministic PyTorch-style Linear init: U(-1/sqrt(fan_in), 1/sqrt(fan_in)).
    Returns W already transposed to (in_features, out_features) and b as (1, out_features)."""
    k_w, k_b = jax.random.split(key)
    bound = 1.0 / jnp.sqrt(jnp.float32(in_features))
    w = jax.random.uniform(k_w, (in_features, out_features), jnp.float32, -bound, bound)
    b = jax.random.uniform(k_b, (1, out_features), jnp.float32, -bound, bound)
    return w, b


def reference_forward_bf16(x, w1, b1, w2, b2, w3, b3):
    """Reference matching the kernel's numerics (bf16 matmul operands, f32 accumulation)."""
    h1 = jnp.dot(x.astype(jnp.bfloat16), w1.astype(jnp.bfloat16),
                 preferred_element_type=jnp.float32)
    h1 = jnp.maximum(h1 + b1, 0.0)
    h2 = jnp.dot(h1.astype(jnp.bfloat16), w2.astype(jnp.bfloat16),
                 preferred_element_type=jnp.float32)
    h2 = jnp.maximum(h2 + b2, 0.0)
    return jnp.sum(h2 * w3.reshape(1, -1), axis=-1, keepdims=True) + b3.reshape(1, 1)


def reference_forward_f32(x, w1, b1, w2, b2, w3, b3):
    h1 = jnp.maximum(x @ w1 + b1, 0.0)
    h2 = jnp.maximum(h1 @ w2 + b2, 0.0)
    return h2 @ w3 + b3


if __name__ == "__main__":
    key = jax.random.PRNGKey(0)
    k_x, k1, k2, k3 = jax.random.split(key, 4)

    batch = 256          # exercises the batch grid (2 tiles of 128)
    input_size = 32
    hidden1 = 256
    hidden2 = 128

    x = jax.random.normal(k_x, (batch, input_size), jnp.float32)
    w1, b1 = init_linear_params(k1, input_size, hidden1)
    w2, b2 = init_linear_params(k2, hidden1, hidden2)
    w3, b3 = init_linear_params(k3, hidden2, 1)

    out = mlp_h2_forward(x, w1, b1, w2, b2, w3, b3, tb=128)
    out = jax.block_until_ready(out)

    assert out.shape == (batch, 1), out.shape

    # Tight check vs a reference using the same bf16-operand / f32-accumulate numerics.
    ref_bf16 = reference_forward_bf16(x, w1, b1, w2, b2, w3, b3)
    assert jnp.allclose(out, ref_bf16, atol=1e-4, rtol=1e-4), "mismatch vs bf16 reference"

    # Loose sanity check vs full-f32 math (bf16 matmul operands -> ~1e-2 relative error).
    ref_f32 = reference_forward_f32(x, w1, b1, w2, b2, w3, b3)
    assert jnp.allclose(out, ref_f32, atol=5e-2, rtol=5e-2), "mismatch vs f32 reference"

    print("KERNEL_OK")
</pallas_src>

<mosaic_0001>
module attributes {stable_mosaic.version = 11 : i64} {
  func.func @mlp_h2_kernel(%arg0: i32, %arg1: memref<128x32xf32, #tpu.memory_space<vmem>>, %arg2: memref<32x256xf32, #tpu.memory_space<vmem>>, %arg3: memref<1x256xf32, #tpu.memory_space<vmem>>, %arg4: memref<256x128xf32, #tpu.memory_space<vmem>>, %arg5: memref<1x128xf32, #tpu.memory_space<vmem>>, %arg6: memref<1x128xf32, #tpu.memory_space<vmem>>, %arg7: memref<1x1xf32, #tpu.memory_space<smem>>, %arg8: memref<128x1xf32, #tpu.memory_space<vmem>>) attributes {dimension_semantics = [#tpu.dimension_semantics<parallel>], iteration_bounds = array<i64: 2>, scalar_prefetch = 0 : i64, scratch_operands = 0 : i64, tpu.core_type = #tpu.core_type<tc>, window_params = [{transform_indices = @transform_0, window_bounds = array<i64: 128, 32>}, {pipeline_mode = #tpu.pipeline_mode<synchronous>, transform_indices = @transform_1, window_bounds = array<i64: 32, 256>}, {pipeline_mode = #tpu.pipeline_mode<synchronous>, transform_indices = @transform_2, window_bounds = array<i64: 1, 256>}, {pipeline_mode = #tpu.pipeline_mode<synchronous>, transform_indices = @transform_3, window_bounds = array<i64: 256, 128>}, {pipeline_mode = #tpu.pipeline_mode<synchronous>, transform_indices = @transform_4, window_bounds = array<i64: 1, 128>}, {pipeline_mode = #tpu.pipeline_mode<synchronous>, transform_indices = @transform_5, window_bounds = array<i64: 1, 128>}, {transform_indices = @transform_6, window_bounds = array<i64: 1, 1>}, {transform_indices = @transform_7, window_bounds = array<i64: 128, 1>}]} {
    %c0 = arith.constant 0 : index
    %c0_0 = arith.constant 0 : index
    %0 = vector.load %arg1[%c0, %c0_0] : memref<128x32xf32, #tpu.memory_space<vmem>>, vector<128x32xf32>
    %1 = arith.truncf %0 : vector<128x32xf32> to vector<128x32xbf16>
    %c0_1 = arith.constant 0 : index
    %c0_2 = arith.constant 0 : index
    %2 = vector.load %arg2[%c0_1, %c0_2] : memref<32x256xf32, #tpu.memory_space<vmem>>, vector<32x256xf32>
    %3 = arith.truncf %2 : vector<32x256xf32> to vector<32x256xbf16>
    %cst = arith.constant dense<0.000000e+00> : vector<128x256xf32>
    %4 = tpu.matmul %1, %3, %cst {dimension_numbers = #tpu.dot_dimension_numbers<[1], [0], [0], [1], [0, 0, 1, 1], [], []>} : vector<128x32xbf16>, vector<32x256xbf16>, vector<128x256xf32> -> vector<128x256xf32>
    %c0_3 = arith.constant 0 : index
    %c0_4 = arith.constant 0 : index
    %5 = vector.load %arg3[%c0_3, %c0_4] : memref<1x256xf32, #tpu.memory_space<vmem>>, vector<1x256xf32>
    %6 = vector.broadcast %5 : vector<1x256xf32> to vector<128x256xf32>
    %7 = arith.addf %4, %6 : vector<128x256xf32>
    %cst_5 = arith.constant 0.000000e+00 : f32
    %8 = vector.broadcast %cst_5 : f32 to vector<128x256xf32>
    %9 = arith.maximumf %7, %8 : vector<128x256xf32>
    %c0_6 = arith.constant 0 : index
    %c0_7 = arith.constant 0 : index
    %10 = vector.load %arg4[%c0_6, %c0_7] : memref<256x128xf32, #tpu.memory_space<vmem>>, vector<256x128xf32>
    %11 = arith.truncf %10 : vector<256x128xf32> to vector<256x128xbf16>
    %12 = arith.truncf %9 : vector<128x256xf32> to vector<128x256xbf16>
    %cst_8 = arith.constant dense<0.000000e+00> : vector<128x128xf32>
    %13 = tpu.matmul %12, %11, %cst_8 {dimension_numbers = #tpu.dot_dimension_numbers<[1], [0], [0], [1], [0, 0, 1, 1], [], []>} : vector<128x256xbf16>, vector<256x128xbf16>, vector<128x128xf32> -> vector<128x128xf32>
    %c0_9 = arith.constant 0 : index
    %c0_10 = arith.constant 0 : index
    %14 = vector.load %arg5[%c0_9, %c0_10] : memref<1x128xf32, #tpu.memory_space<vmem>>, vector<1x128xf32>
    %15 = vector.broadcast %14 : vector<1x128xf32> to vector<128x128xf32>
    %16 = arith.addf %13, %15 : vector<128x128xf32>
    %cst_11 = arith.constant 0.000000e+00 : f32
    %17 = vector.broadcast %cst_11 : f32 to vector<128x128xf32>
    %18 = arith.maximumf %16, %17 : vector<128x128xf32>
    %c0_12 = arith.constant 0 : index
    %c0_13 = arith.constant 0 : index
    %19 = vector.load %arg6[%c0_12, %c0_13] : memref<1x128xf32, #tpu.memory_space<vmem>>, vector<1x128xf32>
    %20 = vector.broadcast %19 : vector<1x128xf32> to vector<128x128xf32>
    %21 = arith.mulf %18, %20 : vector<128x128xf32>
    %cst_14 = arith.constant dense<0.000000e+00> : vector<128xf32>
    %22 = vector.multi_reduction <add>, %21, %cst_14 [1] : vector<128x128xf32> to vector<128xf32>
    %23 = vector.shape_cast %22 : vector<128xf32> to vector<128x1xf32>
    %c0_15 = arith.constant 0 : index
    %c0_16 = arith.constant 0 : index
    %24 = memref.load %arg7[%c0_15, %c0_16] : memref<1x1xf32, #tpu.memory_space<smem>>
    %25 = vector.broadcast %24 : f32 to vector<128x1xf32>
    %26 = arith.addf %23, %25 : vector<128x1xf32>
    %c0_17 = arith.constant 0 : index
    %c0_18 = arith.constant 0 : index
    %27 = vector.load %arg8[%c0_17, %c0_18] : memref<128x1xf32, #tpu.memory_space<vmem>>, vector<128x1xf32>
    tpu.vector_store %arg8[%c0_17, %c0_18], %26 {strides = array<i32>} : memref<128x1xf32, #tpu.memory_space<vmem>>, vector<128x1xf32>,
    return
  }
  func.func @transform_0(%arg0: i32) -> (i32, i32) {
    %c0_i32 = arith.constant 0 : i32
    %c0_i32_0 = arith.constant 0 : i32
    return %arg0, %c0_i32 : i32, i32
  }
  func.func @transform_1(%arg0: i32) -> (i32, i32) {
    %c0_i32 = arith.constant 0 : i32
    %c0_i32_0 = arith.constant 0 : i32
    %c0_i32_1 = arith.constant 0 : i32
    return %c0_i32, %c0_i32_0 : i32, i32
  }
  func.func @transform_2(%arg0: i32) -> (i32, i32) {
    %c0_i32 = arith.constant 0 : i32
    %c0_i32_0 = arith.constant 0 : i32
    %c0_i32_1 = arith.constant 0 : i32
    return %c0_i32, %c0_i32_0 : i32, i32
  }
  func.func @transform_3(%arg0: i32) -> (i32, i32) {
    %c0_i32 = arith.constant 0 : i32
    %c0_i32_0 = arith.constant 0 : i32
    %c0_i32_1 = arith.constant 0 : i32
    return %c0_i32, %c0_i32_0 : i32, i32
  }
  func.func @transform_4(%arg0: i32) -> (i32, i32) {
    %c0_i32 = arith.constant 0 : i32
    %c0_i32_0 = arith.constant 0 : i32
    %c0_i32_1 = arith.constant 0 : i32
    return %c0_i32, %c0_i32_0 : i32, i32
  }
  func.func @transform_5(%arg0: i32) -> (i32, i32) {
    %c0_i32 = arith.constant 0 : i32
    %c0_i32_0 = arith.constant 0 : i32
    %c0_i32_1 = arith.constant 0 : i32
    return %c0_i32, %c0_i32_0 : i32, i32
  }
  func.func @transform_6(%arg0: i32) -> (i32, i32) {
    %c0_i32 = arith.constant 0 : i32
    %c0_i32_0 = arith.constant 0 : i32
    %c0_i32_1 = arith.constant 0 : i32
    return %c0_i32, %c0_i32_0 : i32, i32
  }
  func.func @transform_7(%arg0: i32) -> (i32, i32) {
    %c0_i32 = arith.constant 0 : i32
    %c0_i32_0 = arith.constant 0 : i32
    return %arg0, %c0_i32 : i32, i32
  }
}

</mosaic_0001>

<bundles_post_ra>
// kernel: tpu_custom_call.1
= control target key start
LH: loop header
LB: loop body
LE: loop exit
PB: predicated region body
PF: predicated region fallthrough
CT: control target
= control target key end

     0   :  { %s994_s26 = smov 0   ;;  %s1287_s0 = inlined_call_operand.vmem [shape: f32[256,32], index: 0, kind: input, shape index: {}]   ;;  %s1288_s1 = inlined_call_operand.vmem [shape: f32[32,256], index: 1, kind: input, shape index: {}]   ;;  %s1289_s2 = inlined_call_operand.vmem [shape: f32[1,256], index: 2, kind: input, shape index: {}]   ;;  %s1290_s3 = inlined_call_operand.vmem [shape: f32[256,128], index: 3, kind: input, shape index: {}]   ;;  %s1291_s4 = inlined_call_operand.vmem [shape: f32[1,128], index: 4, kind: input, shape index: {}]   ;;  %s1292_s5 = inlined_call_operand.vmem [shape: f32[1,128], index: 5, kind: input, shape index: {}]   ;;  %s1293_s6 = inlined_call_operand.<no memory space> [shape: f32[1,1], index: 6, kind: input, shape index: {}]   ;;  %s1294_s7 = inlined_call_operand.vmem [shape: f32[256,1], index: 7, kind: output, shape index: {}]  }
   0x1   :  { %12 = sst [smem:[#allocation2]] %s1293_s6 }
   0x2 LB: > { %s832_s27 = sadd.s32 4294967295, %s948_s26   ;;  %p836_p0 = scmp.ge.s32.totalorder %s948_s26, 1  ;;  %s948_s26 = sphi %s994_s26, %s18_s26  }
   0x3   : > { %p239_p1 = scmp.lt.s32.totalorder %s948_s26, 3 }
   0x5   : > { %p240_p2 = pnand %p836_p0, %p239_p1 }
   0x6   : > { %s837_s10 = sshll.u32 (!%p240_p2), %s832_s27, 4  ;;  %s741_s8 = sld [smem:[#allocation2]] (!%p240_p2) }
   0x7   : > { %243 = sbr.rel (%p240_p2) target bundleno = 633 (0x279), region = 48  ;;  %p272_p3 = scmp.lt.s32.totalorder (!%p240_p2), %s837_s10, 31 }
   0xc   : > { %v313_v0 = vld [vmem:[%s1288_s1 + $0x28] sm:$0xff]  ;;  %v315_v1 = vld [vmem:[%s1288_s1 + $0x38] sm:$0xff]  ;;  %v312_v2 = vld [vmem:[%s1288_s1 + $0x20] sm:$0xff]  ;;  %v950_v7 = vmov 0   ;;  %s1296_s10 = smov (!%p272_p3, %s837_s10), 31  ;;  %vm332_vm0 = vcmask 261120  }
   0xd   : > { %v319_v3 = vpack.c.bf16 %v315_v1, %v313_v0  ;;  %v314_v4 = vld [vmem:[%s1288_s1 + $0x30] sm:$0xff]  ;;  %v309_v5 = vld [vmem:[%s1288_s1 + $0x8] sm:$0xff]  ;;  %v311_v6 = vld [vmem:[%s1288_s1 + $0x18] sm:$0xff]  ;;  %389 = vmatprep.mubr.bf16.mxu0 %v950_v7  ;;  %s838_s11 = sshll.u32 %s1296_s10, 3  ;;  %vm759_vm1 = vcmask 7168  }
   0xe   : > { %v318_v8 = vpack.c.bf16 %v314_v4, %v312_v2  ;;  %v317_v9 = vpack.c.bf16 %v311_v6, %v309_v5  ;;  %v308_v10 = vld [vmem:[%s1288_s1] sm:$0xff]  ;;  %v310_v11 = vld [vmem:[%s1288_s1 + $0x10] sm:$0xff]  ;;  %v533_v13 = vld [vmem:[%s1290_s3 + $0xf8] sm:$0xff]  ;;  %s1053_s14 = scalar_lea.vmem %s1287_s0, %s838_s11  ;;  %s1250_s13 = scalar_lea.vmem %s1294_s7, %s838_s11 }
   0xf   : > { %v532_v12 = vld [vmem:[%s1290_s3 + $0xf0] sm:$0xff]  ;;  %369 = vmatprep.subr.bf16.mxu0 %v319_v3  ;;  %v517_v15 = vld [vmem:[%s1290_s3 + $0x78] sm:$0xff]  ;;  %v316_v16 = vpack.c.bf16 %v310_v11, %v308_v10  ;;  %v530_v18 = vld [vmem:[%s1290_s3 + $0xe0] sm:$0xff] }
  0x10   : > { %v516_v14 = vld [vmem:[%s1290_s3 + $0x70] sm:$0xff]  ;;  %370 = vmatpush1.bf16.msra.mxu0 %v318_v8  ;;  %v549_v17 = vpack.c.bf16 %v533_v13, %v532_v12  ;;  %v531_v19 = vld [vmem:[%s1290_s3 + $0xe8] sm:$0xff]  ;;  %v514_v22 = vld [vmem:[%s1290_s3 + $0x60] sm:$0xff] }
  0x11   : > { %371 = vmatprep.subr.bf16.mxu0 %v317_v9  ;;  %v541_v20 = vpack.c.bf16 %v517_v15, %v516_v14  ;;  %v548_v21 = vpack.c.bf16 %v531_v19, %v530_v18  ;;  %v515_v23 = vld [vmem:[%s1290_s3 + $0x68] sm:$0xff]  ;;  %v284_v24 = vld [vmem:[%s1053_s14] sm:$0xff]  ;;  %v528_v27 = vld [vmem:[%s1290_s3 + $0xd0] sm:$0xff] }
  0x12   : > { %917 = vmatprep.subr.bf16.mxu1 %v549_v17  ;;  %v285_v25 = vld [vmem:[%s1053_s14 + $0x8] sm:$0xff]  ;;  %v529_v28 = vld [vmem:[%s1290_s3 + $0xd8] sm:$0xff]  ;;  %v540_v29 = vpack.c.bf16 %v515_v23, %v514_v22  ;;  %v512_v30 = vld [vmem:[%s1290_s3 + $0x50] sm:$0xff] }
  0x13   : > { %925 = vmatpush3.bf16.msra.mxu1 %v541_v20  ;;  %v300_v26 = vpack.c.bf16 %v285_v25, %v284_v24  ;;  %v513_v31 = vld [vmem:[%s1290_s3 + $0x58] sm:$0xff]  ;;  %v547_v32 = vpack.c.bf16 %v529_v28, %v528_v27  ;;  %v526_v33 = vld [vmem:[%s1290_s3 + $0xc0] sm:$0xff]  ;;  %v286_v34 = vld [vmem:[%s1053_s14 + $0x10] sm:$0xff] }
  0x14   : > { %372 = vmatpush1.bf16.msra.mxu0 %v316_v16  ;;  %918 = vmatprep.subr.bf16.mxu1 %v548_v21  ;;  %v287_v35 = vld [vmem:[%s1053_s14 + $0x18] sm:$0xff]  ;;  %v527_v36 = vld [vmem:[%s1290_s3 + $0xc8] sm:$0xff]  ;;  %v539_v37 = vpack.c.bf16 %v513_v31, %v512_v30  ;;  %v510_v39 = vld [vmem:[%s1290_s3 + $0x40] sm:$0xff] }
  0x15   : > { %853 = vmatprep.subr.bf16.mxu0 %v549_v17  ;;  %v546_v38 = vpack.c.bf16 %v527_v36, %v526_v33  ;;  %v511_v40 = vld [vmem:[%s1290_s3 + $0x48] sm:$0xff]  ;;  %v301_v41 = vpack.c.bf16 %v287_v35, %v286_v34  ;;  %v524_v42 = vld [vmem:[%s1290_s3 + $0xb0] sm:$0xff]  ;;  %v525_v43 = vld [vmem:[%s1290_s3 + $0xb8] sm:$0xff] }
  0x16   : > { %v538_v44 = vpack.c.bf16 %v511_v40, %v510_v39  ;;  %v508_v45 = vld [vmem:[%s1290_s3 + $0x30] sm:$0xff]  ;;  %v509_v46 = vld [vmem:[%s1290_s3 + $0x38] sm:$0xff]  ;;  %v545_v47 = vpack.c.bf16 %v525_v43, %v524_v42  ;;  %v288_v48 = vld [vmem:[%s1053_s14 + $0x20] sm:$0xff] }
  0x17   : > { %841 = vmatmul.mubr.msk.bf16.vlgmr.msra.gmra.mxu0 %vm332_vm0, %v300_v26  ;;  %926 = vmatpush3.bf16.msra.mxu1 %v540_v29  ;;  %v289_v49 = vld [vmem:[%s1053_s14 + $0x28] sm:$0xff]  ;;  %v537_v50 = vpack.c.bf16 %v509_v46, %v508_v45  ;;  %v290_v52 = vld [vmem:[%s1053_s14 + $0x30] sm:$0xff]  ;;  %v291_v53 = vld [vmem:[%s1053_s14 + $0x38] sm:$0xff] }
  0x18   : > { %399 = vmatprep.mubr.bf16.mxu0 %v950_v7  ;;  %854 = vmatpush3.bf16.msra.mxu0 %v541_v20  ;;  %v302_v51 = vpack.c.bf16 %v289_v49, %v288_v48  ;;  %v303_v54 = vpack.c.bf16 %v291_v53, %v290_v52  ;;  %v292_v55 = vld [vmem:[%s1053_s14 + $0x40] sm:$0xff]  ;;  %v293_v56 = vld [vmem:[%s1053_s14 + $0x48] sm:$0xff]  ;;  %v294_v58 = vld [vmem:[%s1053_s14 + $0x50] sm:$0xff] }
  0x19   : > { %855 = vmatprep.subr.bf16.mxu0 %v548_v21  ;;  %919 = vmatprep.subr.bf16.mxu1 %v547_v32  ;;  %v304_v57 = vpack.c.bf16 %v293_v56, %v292_v55  ;;  %v295_v59 = vld [vmem:[%s1053_s14 + $0x58] sm:$0xff]  ;;  %v296_v61 = vld [vmem:[%s1053_s14 + $0x60] sm:$0xff]  ;;  %v297_v62 = vld [vmem:[%s1053_s14 + $0x68] sm:$0xff]  ;;  %v322_v21 = vlaneseq }
  0x1a   : > { %v305_v60 = vpack.c.bf16 %v295_v59, %v294_v58  ;;  %v306_v63 = vpack.c.bf16 %v297_v62, %v296_v61  ;;  %v298_v0 = vld [vmem:[%s1053_s14 + $0x70] sm:$0xff]  ;;  %v299_v1 = vld [vmem:[%s1053_s14 + $0x78] sm:$0xff]  ;;  %v522_v3 = vld [vmem:[%s1290_s3 + $0xa0] sm:$0xff] }
  0x1b   : > { %927 = vmatpush3.bf16.msra.mxu1 %v539_v37  ;;  %v307_v2 = vpack.c.bf16 %v299_v1, %v298_v0  ;;  %v523_v4 = vld [vmem:[%s1290_s3 + $0xa8] sm:$0xff]  ;;  %v506_v6 = vld [vmem:[%s1290_s3 + $0x20] sm:$0xff]  ;;  %v520_v9 = vld [vmem:[%s1290_s3 + $0x90] sm:$0xff]  ;;  %v323_v22 = vshrl.u32 %v322_v21, 7 }
  0x1c   : > { %856 = vmatpush3.bf16.msra.mxu0 %v540_v29  ;;  %920 = vmatprep.subr.bf16.mxu1 %v546_v38  ;;  %v544_v5 = vpack.c.bf16 %v523_v4, %v522_v3  ;;  %v521_v10 = vld [vmem:[%s1290_s3 + $0x98] sm:$0xff]  ;;  %v504_v12 = vld [vmem:[%s1290_s3 + $0x10] sm:$0xff]  ;;  %v518_v15 = vld [vmem:[%s1290_s3 + $0x80] sm:$0xff] }
  0x1d   : > { %857 = vmatprep.subr.bf16.mxu0 %v547_v32  ;;  %v543_v11 = vpack.c.bf16 %v521_v10, %v520_v9  ;;  %v505_v13 = vld [vmem:[%s1290_s3 + $0x18] sm:$0xff]  ;;  %v519_v16 = vld [vmem:[%s1290_s3 + $0x88] sm:$0xff]  ;;  %v502_v18 = vld [vmem:[%s1290_s3] sm:$0xff]  ;;  %v328_v23 = vsub.s32 1, %v323_v22  ;;  %v324_v24 = vsub.s32 0, %v323_v22 }
  0x1e   : > { %v535_v14 = vpack.c.bf16 %v505_v13, %v504_v12  ;;  %v542_v17 = vpack.c.bf16 %v519_v16, %v518_v15  ;;  %v503_v19 = vld [vmem:[%s1290_s3 + $0x8] sm:$0xff]  ;;  %v320_v25 = vld [vmem:[%s1289_s2] sm:$0x3] }
  0x1f   : > { %842 = vmatmul.mubr.msk.bf16.gmra.mxu0 %vm332_vm0, %v301_v41  ;;  %928 = vmatpush3.bf16.msra.mxu1 %v538_v44  ;;  %v534_v20 = vpack.c.bf16 %v503_v19, %v502_v18  ;;  %v1167_v27 = vrot.slane %v320_v25, %v328_v23  ;;  %v1169_v28 = vrot.slane %v320_v25, %v324_v24 }
  0x20   : > { %409 = vmatprep.mubr.bf16.mxu0 %v950_v7  ;;  %858 = vmatpush3.bf16.msra.mxu0 %v539_v37 }
  0x21   : > { %859 = vmatprep.subr.bf16.mxu0 %v546_v38  ;;  %921 = vmatprep.subr.bf16.mxu1 %v545_v47 }
  0x23   : > { %929 = vmatpush3.bf16.msra.mxu1 %v537_v50 }
  0x24   : > { %860 = vmatpush3.bf16.msra.mxu0 %v538_v44  ;;  %922 = vmatprep.subr.bf16.mxu1 %v544_v5 }
  0x25   : > { %861 = vmatprep.subr.bf16.mxu0 %v545_v47 }
  0x27   : > { %843 = vmatmul.mubr.msk.bf16.gmra.mxu0 %vm332_vm0, %v302_v51 }
  0x28   : > { %419 = vmatprep.mubr.bf16.mxu0 %v950_v7  ;;  %862 = vmatpush3.bf16.msra.mxu0 %v537_v50 }
  0x29   : > { %863 = vmatprep.subr.bf16.mxu0 %v544_v5 }
  0x2f   : > { %844 = vmatmul.mubr.msk.bf16.gmra.mxu0 %vm332_vm0, %v303_v54 }
  0x30   : > { %429 = vmatprep.mubr.bf16.mxu0 %v950_v7 }
  0x37   : > { %845 = vmatmul.mubr.msk.bf16.gmra.mxu0 %vm332_vm0, %v304_v57 }
  0x38   : > { %439 = vmatprep.mubr.bf16.mxu0 %v950_v7 }
  0x3f   : > { %846 = vmatmul.mubr.msk.bf16.gmra.mxu0 %vm332_vm0, %v305_v60 }
  0x40   : > { %449 = vmatprep.mubr.bf16.mxu0 %v950_v7 }
  0x47   : > { %847 = vmatmul.mubr.msk.bf16.gmra.mxu0 %vm332_vm0, %v306_v63 }
  0x48   : > { %459 = vmatprep.mubr.bf16.mxu0 %v950_v7  ;;  %v507_v7 = vld [vmem:[%s1290_s3 + $0x28] sm:$0xff] }
  0x49   : > { %v536_v8 = vpack.c.bf16 %v507_v7, %v506_v6 }
  0x4b   : > { %864 = vmatpush3.bf16.msra.mxu0 %v536_v8  ;;  %930 = vmatpush3.bf16.msra.mxu1 %v536_v8 }
  0x4c   : > { %865 = vmatprep.subr.bf16.mxu0 %v543_v11  ;;  %923 = vmatprep.subr.bf16.mxu1 %v543_v11 }
  0x4f   : > { %848 = vmatmul.mubr.msk.bf16.gmra.mxu0 %vm332_vm0, %v307_v2  ;;  %931 = vmatpush3.bf16.msra.mxu1 %v535_v14 }
  0x50   : > { %866 = vmatpush3.bf16.msra.mxu0 %v535_v14  ;;  %924 = vmatprep.subr.bf16.mxu1 %v542_v17 }
  0x51   : > { %867 = vmatprep.subr.bf16.mxu0 %v542_v17 }
  0x53   : > { %932 = vmatpush3.bf16.msra.mxu1 %v534_v20 }
  0x54   : > { %868 = vmatpush3.bf16.msra.mxu0 %v534_v20 }
  0xd7   : > { %v391_v26 = vpop.f32.mrf.mxu0 }
  0xd8   : > { %v392_v33 = vadd.f32 %v391_v26, %v1169_v28 }
  0xd9   : > { %v393_v29 = vpop.f32.mrf.mxu0 }
  0xda   : > { %v394_v31 = vadd.f32 %v393_v29, %v1167_v27  ;;  %v470_v40 = vmax.f32 %v392_v33, 0.0 }
  0xdb   : > { %v395_v30 = vpop.f32.mrf.mxu0 }
  0xdc   : > { %v396_v32 = vadd.f32 %v395_v30, %v1169_v28  ;;  %v471_v38 = vmax.f32 %v394_v31, 0.0 }
  0xdd   : > { %v397_v34 = vpop.f32.mrf.mxu0 }
  0xde   : > { %v398_v35 = vadd.f32 %v397_v34, %v1167_v27  ;;  %v472_v36 = vmax.f32 %v396_v32, 0.0 }
  0xdf   : > { %v401_v37 = vpop.f32.mrf.mxu0 }
  0xe0   : > { %v473_v39 = vmax.f32 %v398_v35, 0.0  ;;  %v550_v43 = vpack.c.bf16 %v472_v36, %v470_v40  ;;  %v402_v47 = vadd.f32 %v401_v37, %v1169_v28 }
  0xe1   : > { %v403_v41 = vpop.f32.mrf.mxu0 }
  0xe2   : > { %v551_v42 = vpack.c.bf16 %v473_v39, %v471_v38  ;;  %v404_v45 = vadd.f32 %v403_v41, %v1167_v27  ;;  %v474_v54 = vmax.f32 %v402_v47, 0.0 }
  0xe3   : > { %v405_v44 = vpop.f32.mrf.mxu0 }
  0xe4   : > { %v406_v46 = vadd.f32 %v405_v44, %v1169_v28  ;;  %605 = vmatprep.mubr.bf16.mxu0 %v551_v42  ;;  %v475_v52 = vmax.f32 %v404_v45, 0.0 }
  0xe5   : > { %v407_v48 = vpop.f32.mrf.mxu0  ;;  %606 = vmatmul.mubr.bf16.vlgmr.msra.gmra.mxu0 %v550_v43 }
  0xe6   : > { %v408_v49 = vadd.f32 %v407_v48, %v1167_v27  ;;  %v476_v50 = vmax.f32 %v406_v46, 0.0 }
  0xe7   : > { %v411_v51 = vpop.f32.mrf.mxu0 }
  0xe8   : > { %v477_v53 = vmax.f32 %v408_v49, 0.0  ;;  %v552_v57 = vpack.c.bf16 %v476_v50, %v474_v54  ;;  %v412_v61 = vadd.f32 %v411_v51, %v1169_v28 }
  0xe9   : > { %v413_v55 = vpop.f32.mrf.mxu0 }
  0xea   : > { %v553_v56 = vpack.c.bf16 %v477_v53, %v475_v52  ;;  %v414_v59 = vadd.f32 %v413_v55, %v1167_v27  ;;  %v478_v4 = vmax.f32 %v412_v61, 0.0 }
  0xeb   : > { %v415_v58 = vpop.f32.mrf.mxu0 }
  0xec   : > { %v416_v60 = vadd.f32 %v415_v58, %v1169_v28  ;;  %613 = vmatprep.mubr.bf16.mxu1 %v553_v56  ;;  %v479_v2 = vmax.f32 %v414_v59, 0.0 }
  0xed   : > { %v417_v62 = vpop.f32.mrf.mxu0  ;;  %614 = vmatmul.mubr.bf16.vlgmr.msra.gmra.mxu1 %v552_v57 }
  0xee   : > { %v418_v63 = vadd.f32 %v417_v62, %v1167_v27  ;;  %v480_v0 = vmax.f32 %v416_v60, 0.0 }
  0xef   : > { %v421_v1 = vpop.f32.mrf.mxu0 }
  0xf0   : > { %v481_v3 = vmax.f32 %v418_v63, 0.0  ;;  %v554_v7 = vpack.c.bf16 %v480_v0, %v478_v4  ;;  %v422_v11 = vadd.f32 %v421_v1, %v1169_v28 }
  0xf1   : > { %v423_v5 = vpop.f32.mrf.mxu0 }
  0xf2   : > { %v555_v6 = vpack.c.bf16 %v481_v3, %v479_v2  ;;  %v424_v9 = vadd.f32 %v423_v5, %v1167_v27  ;;  %v482_v18 = vmax.f32 %v422_v11, 0.0 }
  0xf3   : > { %v425_v8 = vpop.f32.mrf.mxu0 }
  0xf4   : > { %v426_v10 = vadd.f32 %v425_v8, %v1169_v28  ;;  %621 = vmatprep.mubr.bf16.mxu1 %v555_v6  ;;  %v483_v16 = vmax.f32 %v424_v9, 0.0 }
  0xf5   : > { %v427_v12 = vpop.f32.mrf.mxu0  ;;  %622 = vmatmul.mubr.bf16.gmra.mxu1 %v554_v7 }
  0xf6   : > { %v428_v13 = vadd.f32 %v427_v12, %v1167_v27  ;;  %v484_v14 = vmax.f32 %v426_v10, 0.0 }
  0xf7   : > { %v431_v15 = vpop.f32.mrf.mxu0 }
  0xf8   : > { %v485_v17 = vmax.f32 %v428_v13, 0.0  ;;  %v556_v21 = vpack.c.bf16 %v484_v14, %v482_v18  ;;  %v432_v25 = vadd.f32 %v431_v15, %v1169_v28 }
  0xf9   : > { %v433_v19 = vpop.f32.mrf.mxu0 }
  0xfa   : > { %v557_v20 = vpack.c.bf16 %v485_v17, %v483_v16  ;;  %v434_v23 = vadd.f32 %v433_v19, %v1167_v27  ;;  %v486_v34 = vmax.f32 %v432_v25, 0.0  ;;  %v1206_v16 = vld [vmem:[%s1291_s4] ss:$0 sm:$0xff] }
  0xfb   : > { %v435_v22 = vpop.f32.mrf.mxu0  ;;  %v1212_v19 = vld [vmem:[%s1292_s5] ss:$0 sm:$0xff] }
  0xfc   : > { %v436_v24 = vadd.f32 %v435_v22, %v1169_v28  ;;  %629 = vmatprep.mubr.bf16.mxu1 %v557_v20  ;;  %v487_v32 = vmax.f32 %v434_v23, 0.0 }
  0xfd   : > { %v437_v26 = vpop.f32.mrf.mxu0  ;;  %630 = vmatmul.mubr.bf16.gmra.mxu1 %v556_v21 }
  0xfe   : > { %v438_v29 = vadd.f32 %v437_v26, %v1167_v27  ;;  %v488_v30 = vmax.f32 %v436_v24, 0.0 }
  0xff   : > { %v441_v31 = vpop.f32.mrf.mxu0 }
 0x100   : > { %v489_v33 = vmax.f32 %v438_v29, 0.0  ;;  %v558_v37 = vpack.c.bf16 %v488_v30, %v486_v34  ;;  %v442_v41 = vadd.f32 %v441_v31, %v1169_v28 }
 0x101   : > { %v443_v35 = vpop.f32.mrf.mxu0 }
 0x102   : > { %v559_v36 = vpack.c.bf16 %v489_v33, %v487_v32  ;;  %v444_v39 = vadd.f32 %v443_v35, %v1167_v27  ;;  %v490_v48 = vmax.f32 %v442_v41, 0.0 }
 0x103   : > { %v445_v38 = vpop.f32.mrf.mxu0 }
 0x104   : > { %v446_v40 = vadd.f32 %v445_v38, %v1169_v28  ;;  %637 = vmatprep.mubr.bf16.mxu1 %v559_v36  ;;  %v491_v46 = vmax.f32 %v444_v39, 0.0 }
 0x105   : > { %v447_v42 = vpop.f32.mrf.mxu0  ;;  %638 = vmatmul.mubr.bf16.gmra.mxu1 %v558_v37 }
 0x106   : > { %v448_v43 = vadd.f32 %v447_v42, %v1167_v27  ;;  %v492_v44 = vmax.f32 %v446_v40, 0.0 }
 0x107   : > { %v451_v45 = vpop.f32.mrf.mxu0 }
 0x108   : > { %v493_v47 = vmax.f32 %v448_v43, 0.0  ;;  %v560_v51 = vpack.c.bf16 %v492_v44, %v490_v48  ;;  %v452_v55 = vadd.f32 %v451_v45, %v1169_v28 }
 0x109   : > { %v453_v49 = vpop.f32.mrf.mxu0 }
 0x10a   : > { %v561_v50 = vpack.c.bf16 %v493_v47, %v491_v46  ;;  %v454_v53 = vadd.f32 %v453_v49, %v1167_v27  ;;  %v494_v62 = vmax.f32 %v452_v55, 0.0 }
 0x10b   : > { %v455_v52 = vpop.f32.mrf.mxu0 }
 0x10c   : > { %v456_v54 = vadd.f32 %v455_v52, %v1169_v28  ;;  %645 = vmatprep.mubr.bf16.mxu1 %v561_v50  ;;  %v495_v60 = vmax.f32 %v454_v53, 0.0 }
 0x10d   : > { %v457_v56 = vpop.f32.mrf.mxu0  ;;  %646 = vmatmul.mubr.bf16.gmra.mxu1 %v560_v51 }
 0x10e   : > { %v458_v57 = vadd.f32 %v457_v56, %v1167_v27  ;;  %v496_v58 = vmax.f32 %v456_v54, 0.0 }
 0x10f   : > { %v461_v59 = vpop.f32.mrf.mxu0 }
 0x110   : > { %v497_v61 = vmax.f32 %v458_v57, 0.0  ;;  %v562_v1 = vpack.c.bf16 %v496_v58, %v494_v62  ;;  %v462_v5 = vadd.f32 %v461_v59, %v1169_v28 }
 0x111   : > { %v463_v63 = vpop.f32.mrf.mxu0 }
 0x112   : > { %v563_v0 = vpack.c.bf16 %v497_v61, %v495_v60  ;;  %v464_v3 = vadd.f32 %v463_v63, %v1167_v27  ;;  %v498_v11 = vmax.f32 %v462_v5, 0.0 }
 0x113   : > { %v465_v2 = vpop.f32.mrf.mxu0 }
 0x114   : > { %v466_v4 = vadd.f32 %v465_v2, %v1169_v28  ;;  %653 = vmatprep.mubr.bf16.mxu1 %v563_v0  ;;  %v499_v9 = vmax.f32 %v464_v3, 0.0 }
 0x115   : > { %v467_v6 = vpop.f32.mrf.mxu0  ;;  %654 = vmatmul.mubr.bf16.gmra.mxu1 %v562_v1 }
 0x116   : > { %v468_v7 = vadd.f32 %v467_v6, %v1167_v27  ;;  %v500_v8 = vmax.f32 %v466_v4, 0.0 }
 0x118   : > { %v501_v10 = vmax.f32 %v468_v7, 0.0  ;;  %v564_v13 = vpack.c.bf16 %v500_v8, %v498_v11 }
 0x11a   : > { %v565_v12 = vpack.c.bf16 %v501_v10, %v499_v9 }
 0x11c   : > { %661 = vmatprep.mubr.bf16.mxu1 %v565_v12 }
 0x11d   : > { %662 = vmatmul.mubr.bf16.gmra.mxu1 %v564_v13 }
 0x1a5   : > { %v869_v14 = vpop.f32.mrf.mxu0 }
 0x1a7   : > { %v870_v15 = vpop.f32.mrf.mxu0 }
 0x1a8   : > { %v871_v28 = vadd.f32 %v870_v15, %v869_v14 }
 0x1a9   : > { %v872_v17 = vpop.f32.mrf.mxu0 }
 0x1aa   : > { %v608_v18 = vadd.f32 %v871_v28, %v1206_v16 }
 0x1ab   : > { %v873_v27 = vpop.f32.mrf.mxu0 }
 0x1ac   : > { %v874_v20 = vadd.f32 %v873_v27, %v872_v17  ;;  %v670_v21 = vmax.f32 %v608_v18, 0.0 }
 0x1ad   : > { %v875_v22 = vpop.f32.mrf.mxu1 }
 0x1ae   : > { %v611_v23 = vadd.f32 %v874_v20, %v1206_v16  ;;  %v693_v24 = vmul.f32 %v1212_v19, %v670_v21 }
 0x1af   : > { %v876_v25 = vpop.f32.mrf.mxu1 }
 0x1b0   : > { %v671_v26 = vmax.f32 %v611_v23, 0.0  ;;  %v877_v29 = vadd.f32 %v876_v25, %v875_v22  ;;  %709 = vadd.xlane.f32.xlu0 %v693_v24 }
 0x1b1   : > { %v878_v30 = vpop.f32.mrf.mxu1 }
 0x1b2   : > { %v694_v31 = vmul.f32 %v1212_v19, %v671_v26  ;;  %v616_v32 = vadd.f32 %v877_v29, %v1206_v16 }
 0x1b3   : > { %v879_v33 = vpop.f32.mrf.mxu1 }
 0x1b4   : > { %v880_v34 = vadd.f32 %v879_v33, %v878_v30  ;;  %711 = vadd.xlane.f32.xlu0 %v694_v31  ;;  %v672_v35 = vmax.f32 %v616_v32, 0.0 }
 0x1b5   : > { %v881_v36 = vpop.f32.mrf.mxu1 }
 0x1b6   : > { %v619_v37 = vadd.f32 %v880_v34, %v1206_v16  ;;  %v695_v38 = vmul.f32 %v1212_v19, %v672_v35 }
 0x1b7   : > { %v882_v39 = vpop.f32.mrf.mxu1 }
 0x1b8   : > { %v673_v40 = vmax.f32 %v619_v37, 0.0  ;;  %v883_v41 = vadd.f32 %v882_v39, %v881_v36  ;;  %713 = vadd.xlane.f32.xlu1 %v695_v38 }
 0x1b9   : > { %v884_v42 = vpop.f32.mrf.mxu1 }
 0x1ba   : > { %v624_v43 = vadd.f32 %v883_v41, %v1206_v16  ;;  %v696_v44 = vmul.f32 %v1212_v19, %v673_v40 }
 0x1bb   : > { %v885_v45 = vpop.f32.mrf.mxu1 }
 0x1bc   : > { %v674_v46 = vmax.f32 %v624_v43, 0.0  ;;  %v886_v47 = vadd.f32 %v885_v45, %v884_v42  ;;  %715 = vadd.xlane.f32.xlu1 %v696_v44 }
 0x1bd   : > { %v887_v48 = vpop.f32.mrf.mxu1 }
 0x1be   : > { %v627_v49 = vadd.f32 %v886_v47, %v1206_v16  ;;  %v697_v50 = vmul.f32 %v1212_v19, %v674_v46 }
 0x1bf   : > { %v888_v51 = vpop.f32.mrf.mxu1 }
 0x1c0   : > { %v675_v52 = vmax.f32 %v627_v49, 0.0  ;;  %v889_v53 = vadd.f32 %v888_v51, %v887_v48  ;;  %717 = vadd.xlane.f32.xlu0 %v697_v50  ;;  %v742_v50 = vstv %s741_s8 }
 0x1c1   : > { %v890_v54 = vpop.f32.mrf.mxu1 }
 0x1c2   : > { %v632_v55 = vadd.f32 %v889_v53, %v1206_v16  ;;  %v698_v56 = vmul.f32 %v1212_v19, %v675_v52 }
 0x1c3   : > { %v891_v57 = vpop.f32.mrf.mxu1 }
 0x1c4   : > { %v676_v58 = vmax.f32 %v632_v55, 0.0  ;;  %v892_v59 = vadd.f32 %v891_v57, %v890_v54  ;;  %719 = vadd.xlane.f32.xlu1 %v698_v56 }
 0x1c5   : > { %v893_v60 = vpop.f32.mrf.mxu1 }
 0x1c6   : > { %v635_v61 = vadd.f32 %v892_v59, %v1206_v16  ;;  %v699_v62 = vmul.f32 %v1212_v19, %v676_v58 }
 0x1c7   : > { %v894_v63 = vpop.f32.mrf.mxu1 }
 0x1c8   : > { %v677_v0 = vmax.f32 %v635_v61, 0.0  ;;  %v895_v1 = vadd.f32 %v894_v63, %v893_v60  ;;  %721 = vadd.xlane.f32.xlu0 %v699_v62 }
 0x1c9   : > { %v896_v2 = vpop.f32.mrf.mxu1 }
 0x1ca   : > { %v640_v3 = vadd.f32 %v895_v1, %v1206_v16  ;;  %v700_v4 = vmul.f32 %v1212_v19, %v677_v0 }
 0x1cb   : > { %v897_v5 = vpop.f32.mrf.mxu1 }
 0x1cc   : > { %v678_v6 = vmax.f32 %v640_v3, 0.0  ;;  %v898_v7 = vadd.f32 %v897_v5, %v896_v2  ;;  %723 = vadd.xlane.f32.xlu1 %v700_v4 }
 0x1cd   : > { %v899_v8 = vpop.f32.mrf.mxu1 }
 0x1ce   : > { %v643_v9 = vadd.f32 %v898_v7, %v1206_v16  ;;  %v701_v10 = vmul.f32 %v1212_v19, %v678_v6 }
 0x1cf   : > { %v900_v11 = vpop.f32.mrf.mxu1 }
 0x1d0   : > { %v679_v12 = vmax.f32 %v643_v9, 0.0  ;;  %v901_v13 = vadd.f32 %v900_v11, %v899_v8  ;;  %725 = vadd.xlane.f32.xlu0 %v701_v10 }
 0x1d1   : > { %v902_v14 = vpop.f32.mrf.mxu1 }
 0x1d2   : > { %v648_v15 = vadd.f32 %v901_v13, %v1206_v16  ;;  %v702_v28 = vmul.f32 %v1212_v19, %v679_v12 }
 0x1d3   : > { %v903_v17 = vpop.f32.mrf.mxu1 }
 0x1d4   : > { %v680_v18 = vmax.f32 %v648_v15, 0.0  ;;  %v904_v27 = vadd.f32 %v903_v17, %v902_v14  ;;  %727 = vadd.xlane.f32.xlu1 %v702_v28 }
 0x1d5   : > { %v905_v20 = vpop.f32.mrf.mxu1 }
 0x1d6   : > { %v651_v21 = vadd.f32 %v904_v27, %v1206_v16  ;;  %v703_v22 = vmul.f32 %v1212_v19, %v680_v18 }
 0x1d7   : > { %v906_v23 = vpop.f32.mrf.mxu1 }
 0x1d8   : > { %v681_v24 = vmax.f32 %v651_v21, 0.0  ;;  %v907_v25 = vadd.f32 %v906_v23, %v905_v20  ;;  %729 = vadd.xlane.f32.xlu0 %v703_v22 }
 0x1d9   : > { %v908_v26 = vpop.f32.mrf.mxu1 }
 0x1da   : > { %v656_v29 = vadd.f32 %v907_v25, %v1206_v16  ;;  %v704_v30 = vmul.f32 %v1212_v19, %v681_v24 }
 0x1db   : > { %v909_v31 = vpop.f32.mrf.mxu1 }
 0x1dc   : > { %v682_v32 = vmax.f32 %v656_v29, 0.0  ;;  %v910_v33 = vadd.f32 %v909_v31, %v908_v26  ;;  %731 = vadd.xlane.f32.xlu1 %v704_v30 }
 0x1dd   : > { %v911_v34 = vpop.f32.mrf.mxu1 }
 0x1de   : > { %v659_v35 = vadd.f32 %v910_v33, %v1206_v16  ;;  %v705_v36 = vmul.f32 %v1212_v19, %v682_v32 }
 0x1df   : > { %v912_v37 = vpop.f32.mrf.mxu1 }
 0x1e0   : > { %v683_v38 = vmax.f32 %v659_v35, 0.0  ;;  %v913_v39 = vadd.f32 %v912_v37, %v911_v34  ;;  %733 = vadd.xlane.f32.xlu0 %v705_v36 }
 0x1e1   : > { %v914_v40 = vpop.f32.mrf.mxu1 }
 0x1e2   : > { %v664_v41 = vadd.f32 %v913_v39, %v1206_v16  ;;  %v706_v42 = vmul.f32 %v1212_v19, %v683_v38 }
 0x1e3   : > { %v915_v43 = vpop.f32.mrf.mxu1 }
 0x1e4   : > { %v684_v44 = vmax.f32 %v664_v41, 0.0  ;;  %v916_v45 = vadd.f32 %v915_v43, %v914_v40  ;;  %735 = vadd.xlane.f32.xlu1 %v706_v42 }
 0x1e6   : > { %v667_v46 = vadd.f32 %v916_v45, %v1206_v16  ;;  %v707_v47 = vmul.f32 %v1212_v19, %v684_v44 }
 0x1e8   : > { %v685_v48 = vmax.f32 %v667_v46, 0.0  ;;  %737 = vadd.xlane.f32.xlu0 %v707_v47 }
 0x1ea   : > { %v708_v49 = vmul.f32 %v1212_v19, %v685_v48 }
 0x1ec   : > { %739 = vadd.xlane.f32.xlu1 %v708_v49 }
 0x239   : > { %v710_v16 = vpop.xlane.xlu0 %709 }
 0x23a   : > { %v743_v51 = vadd.f32 %v742_v50, %v710_v16 }
 0x23c   : > { %760 = vst.msk [vmem:[%s1250_s13] sm:$0xff] %vm759_vm1, %v743_v51 }
 0x23d   : > { %v712_v19 = vpop.xlane.xlu0 %711 }
 0x23e   : > { %v744_v52 = vadd.f32 %v742_v50, %v712_v19 }
 0x240   : > { %761 = vst.msk [vmem:[%s1250_s13 + $0x8] sm:$0xff] %vm759_vm1, %v744_v52 }
 0x241   : > { %v714_v53 = vpop.xlane.xlu1 %713 }
 0x242   : > { %v745_v54 = vadd.f32 %v742_v50, %v714_v53 }
 0x244   : > { %762 = vst.msk [vmem:[%s1250_s13 + $0x10] sm:$0xff] %vm759_vm1, %v745_v54 }
 0x245   : > { %v716_v55 = vpop.xlane.xlu1 %715 }
 0x246   : > { %v746_v56 = vadd.f32 %v742_v50, %v716_v55 }
 0x248   : > { %763 = vst.msk [vmem:[%s1250_s13 + $0x18] sm:$0xff] %vm759_vm1, %v746_v56 }
 0x249   : > { %v718_v57 = vpop.xlane.xlu0 %717 }
 0x24a   : > { %v747_v58 = vadd.f32 %v742_v50, %v718_v57 }
 0x24c   : > { %764 = vst.msk [vmem:[%s1250_s13 + $0x20] sm:$0xff] %vm759_vm1, %v747_v58 }
 0x24d   : > { %v720_v59 = vpop.xlane.xlu1 %719 }
 0x24e   : > { %v748_v60 = vadd.f32 %v742_v50, %v720_v59 }
 0x250   : > { %765 = vst.msk [vmem:[%s1250_s13 + $0x28] sm:$0xff] %vm759_vm1, %v748_v60 }
 0x251   : > { %v722_v61 = vpop.xlane.xlu0 %721 }
 0x252   : > { %v749_v62 = vadd.f32 %v742_v50, %v722_v61 }
 0x254   : > { %766 = vst.msk [vmem:[%s1250_s13 + $0x30] sm:$0xff] %vm759_vm1, %v749_v62 }
 0x255   : > { %v724_v63 = vpop.xlane.xlu1 %723 }
 0x256   : > { %v750_v0 = vadd.f32 %v742_v50, %v724_v63 }
 0x258   : > { %767 = vst.msk [vmem:[%s1250_s13 + $0x38] sm:$0xff] %vm759_vm1, %v750_v0 }
 0x259   : > { %v726_v1 = vpop.xlane.xlu0 %725 }
 0x25a   : > { %v751_v2 = vadd.f32 %v742_v50, %v726_v1 }
 0x25c   : > { %768 = vst.msk [vmem:[%s1250_s13 + $0x40] sm:$0xff] %vm759_vm1, %v751_v2 }
 0x25d   : > { %v728_v3 = vpop.xlane.xlu1 %727 }
 0x25e   : > { %v752_v4 = vadd.f32 %v742_v50, %v728_v3 }
 0x260   : > { %769 = vst.msk [vmem:[%s1250_s13 + $0x48] sm:$0xff] %vm759_vm1, %v752_v4 }
 0x261   : > { %v730_v5 = vpop.xlane.xlu0 %729 }
 0x262   : > { %v753_v6 = vadd.f32 %v742_v50, %v730_v5 }
 0x264   : > { %770 = vst.msk [vmem:[%s1250_s13 + $0x50] sm:$0xff] %vm759_vm1, %v753_v6 }
 0x265   : > { %v732_v7 = vpop.xlane.xlu1 %731 }
 0x266   : > { %v754_v8 = vadd.f32 %v742_v50, %v732_v7 }
 0x268   : > { %771 = vst.msk [vmem:[%s1250_s13 + $0x58] sm:$0xff] %vm759_vm1, %v754_v8 }
 0x269   : > { %v734_v9 = vpop.xlane.xlu0 %733 }
 0x26a   : > { %v755_v10 = vadd.f32 %v742_v50, %v734_v9 }
 0x26c   : > { %772 = vst.msk [vmem:[%s1250_s13 + $0x60] sm:$0xff] %vm759_vm1, %v755_v10 }
 0x26d   : > { %v736_v11 = vpop.xlane.xlu1 %735 }
 0x26e   : > { %v756_v12 = vadd.f32 %v742_v50, %v736_v11 }
 0x270   : > { %773 = vst.msk [vmem:[%s1250_s13 + $0x68] sm:$0xff] %vm759_vm1, %v756_v12 }
 0x271   : > { %v738_v13 = vpop.xlane.xlu0 %737 }
 0x272   : > { %v757_v14 = vadd.f32 %v742_v50, %v738_v13 }
 0x274   : > { %774 = vst.msk [vmem:[%s1250_s13 + $0x70] sm:$0xff] %vm759_vm1, %v757_v14 }
 0x275   : > { %v740_v15 = vpop.xlane.xlu1 %739 }
 0x276   : > { %v758_v28 = vadd.f32 %v742_v50, %v740_v15 }
 0x278   : > { %775 = vst.msk [vmem:[%s1250_s13 + $0x78] sm:$0xff] %vm759_vm1, %v758_v28 }
 0x279 PF: > { %s18_s26 = sadd.s32 1, %s948_s26  }
 0x27a   : > { %p15_p4 = scmp.ge.s32.totalorder %s18_s26, 4  }
 0x27c   :  { %17 = sbr.rel (!%p15_p4) target bundleno = 2 (0x2), region = 78 }

</bundles_post_ra>
